<compile_context>
chip_gen: v6e
topology: v6e:2x2x1
jax: 0.10.0
libtpu: 0.0.40
codegen_flags: <defaults>
</compile_context>

<pallas_src>
import jax
import jax.numpy as jnp
import numpy as np
from jax.experimental import pallas as pl
from jax.experimental.pallas import tpu as pltpu


def _round_up(x, m):
    return ((x + m - 1) // m) * m


# ---------------------------------------------------------------------------
# Pallas kernel: both folding stages for one (batch, point-tile) block.
# All tensors are channels-on-sublanes, points-on-lanes.
# ---------------------------------------------------------------------------
def _subfold_kernel(seed_ref, h1_ref, h2a_ref,
                    w1s_ref, w1b_ref, b1b_ref,
                    wfold_ref, w2b_ref, b2b_ref,
                    w2c_ref, b2c_ref,
                    out_ref):
    seed = seed_ref[...]                                              # (3, TN)

    # folding1 layer 1: seed columns + hoisted per-batch feature part (h1).
    z = jnp.dot(w1s_ref[...], seed, preferred_element_type=jnp.float32) + h1_ref[...]
    z = jnp.maximum(z, 0.0)                                           # (H, TN)

    # folding1 layer 2.
    z = jnp.dot(w1b_ref[...], z, preferred_element_type=jnp.float32) + b1b_ref[...]
    z = jnp.maximum(z, 0.0)                                           # (H/2, TN)

    # folding1 layer 3 fused with folding2 layer 1 (W_fold = w2a_fd @ w1c);
    # h2a already contains b2a + w2a_fd @ b1c + the per-batch feature part.
    z = jnp.dot(wfold_ref[...], z, preferred_element_type=jnp.float32) + h2a_ref[...]
    z = jnp.maximum(z, 0.0)                                           # (H, TN)

    # folding2 layer 2.
    z = jnp.dot(w2b_ref[...], z, preferred_element_type=jnp.float32) + b2b_ref[...]
    z = jnp.maximum(z, 0.0)                                           # (H/2, TN)

    # folding2 layer 3 -> 3 output channels, lane-dense store.
    out = jnp.dot(w2c_ref[...], z, preferred_element_type=jnp.float32) + b2c_ref[...]
    out_ref[...] = out.astype(out_ref.dtype)                          # (3, TN)


# ---------------------------------------------------------------------------
# Parameter construction (deterministic, synthetic) + BN folding.
# ---------------------------------------------------------------------------
def _init_folding_params(key, in_dim, hidden, eps=1e-5):
    ks = jax.random.split(key, 16)
    h2 = hidden // 2

    def u(k, shape, scale=0.1):
        return jax.random.uniform(k, shape, jnp.float32, -scale, scale)

    w1 = u(ks[0], (hidden, in_dim));  b1 = u(ks[1], (hidden,))
    w2 = u(ks[2], (h2, hidden));      b2 = u(ks[3], (h2,))
    w3 = u(ks[4], (3, h2));           b3 = u(ks[5], (3,))

    # BatchNorm1d params (inference semantics with synthetic running stats).
    g1 = 1.0 + u(ks[6], (hidden,)); be1 = u(ks[7], (hidden,))
    m1 = u(ks[8], (hidden,));       v1 = jax.random.uniform(ks[9], (hidden,), jnp.float32, 0.5, 1.5)
    g2 = 1.0 + u(ks[10], (h2,));    be2 = u(ks[11], (h2,))
    m2 = u(ks[12], (h2,));          v2 = jax.random.uniform(ks[13], (h2,), jnp.float32, 0.5, 1.5)

    # Fold BN into the preceding 1x1 conv.
    s1 = g1 / jnp.sqrt(v1 + eps)
    w1f = w1 * s1[:, None]; b1f = (b1 - m1) * s1 + be1
    s2 = g2 / jnp.sqrt(v2 + eps)
    w2f = w2 * s2[:, None]; b2f = (b2 - m2) * s2 + be2

    return dict(w1=w1f, b1=b1f, w2=w2f, b2=b2f, w3=w3, b3=b3)


def init_subfold_params(key, in_channel, hidden_dim=512):
    k1, k2 = jax.random.split(key)
    return dict(f1=_init_folding_params(k1, in_channel + 3, hidden_dim),
                f2=_init_folding_params(k2, in_channel + 3, hidden_dim))


# ---------------------------------------------------------------------------
# Wrapper: weight prep (feature hoisting + bottleneck fusion) + pallas_call.
# ---------------------------------------------------------------------------
def subfold_forward(params, x, c, in_channel, step, tile_n=512):
    """x: (bs, in_channel), c: (bs, 3, step*step)  ->  (bs, 3, step*step)."""
    num_sample = step * step
    bs = x.shape[0]

    f1, f2 = params["f1"], params["f2"]
    hidden = f1["w1"].shape[0]

    # Split first-layer weights into seed-columns vs feature-columns.
    w1a = f1["w1"]                       # (H, 3+C); input order = [seed, features]
    w1a_seed = w1a[:, :3]                # (H, 3)
    w1a_feat = w1a[:, 3:]                # (H, C)
    w2a = f2["w1"]
    w2a_fd = w2a[:, :3]                  # (H, 3)  acts on fd1
    w2a_ft = w2a[:, 3:]                  # (H, C)  acts on features

    # Fuse folding1's 3-wide bottleneck into folding2 layer 1 (exact algebra:
    # no nonlinearity between w1c and w2a_fd).
    w_fold = w2a_fd @ f1["w3"]           # (H, H/2)

    # Hoist the sample-invariant feature projections to once-per-batch.
    h1 = x @ w1a_feat.T + f1["b1"][None, :]                               # (bs, H)
    h2a = x @ w2a_ft.T + f2["b1"][None, :] + (w2a_fd @ f1["b3"])[None, :]  # (bs, H)
    h1 = h1[:, :, None]                  # (bs, H, 1) -> broadcast over lanes
    h2a = h2a[:, :, None]

    w1b = f1["w2"]; b1b = f1["b2"][:, None]
    w2b = f2["w2"]; b2b = f2["b2"][:, None]
    w2c = f2["w3"]; b2c = f2["b3"][:, None]

    # Point tiling along lanes: tile_n multiple of 128, pad num_sample up.
    tile_n = max(128, min(_round_up(tile_n, 128), _round_up(num_sample, 128)))
    ns_pad = _round_up(num_sample, tile_n)
    seed = c
    if ns_pad != num_sample:
        seed = jnp.pad(c, ((0, 0), (0, 0), (0, ns_pad - num_sample)))

    grid = (bs, ns_pad // tile_n)

    def full_spec(a):
        return pl.BlockSpec(a.shape, lambda b, i: (0, 0))

    out = pl.pallas_call(
        _subfold_kernel,
        out_shape=jax.ShapeDtypeStruct((bs, 3, ns_pad), jnp.float32),
        grid_spec=pltpu.PrefetchScalarGridSpec(
            num_scalar_prefetch=0,
            grid=grid,
            in_specs=[
                pl.BlockSpec((None, 3, tile_n), lambda b, i: (b, 0, i)),      # seed
                pl.BlockSpec((None, hidden, 1), lambda b, i: (b, 0, 0)),      # h1
                pl.BlockSpec((None, hidden, 1), lambda b, i: (b, 0, 0)),      # h2a
                full_spec(w1a_seed), full_spec(w1b), full_spec(b1b),
                full_spec(w_fold), full_spec(w2b), full_spec(b2b),
                full_spec(w2c), full_spec(b2c),
            ],
            out_specs=pl.BlockSpec((None, 3, tile_n), lambda b, i: (b, 0, i)),
        ),
        compiler_params=pltpu.CompilerParams(
            dimension_semantics=("parallel", "parallel")),
    )(seed, h1, h2a, w1a_seed, w1b, b1b, w_fold, w2b, b2b, w2c, b2c)

    return out[:, :, :num_sample]


# ---------------------------------------------------------------------------
# Pure-JAX reference (NCW layout, mirrors the PyTorch forward, unfused).
# ---------------------------------------------------------------------------
def subfold_reference(params, x, c, in_channel, step):
    num_sample = step * step
    bs = x.shape[0]
    feats = jnp.broadcast_to(x[:, :, None], (bs, in_channel, num_sample))

    def folding(p, xin):
        z = jnp.einsum("oi,bin->bon", p["w1"], xin) + p["b1"][None, :, None]
        z = jnp.maximum(z, 0.0)
        z = jnp.einsum("oi,bin->bon", p["w2"], z) + p["b2"][None, :, None]
        z = jnp.maximum(z, 0.0)
        return jnp.einsum("oi,bin->bon", p["w3"], z) + p["b3"][None, :, None]

    x1 = jnp.concatenate([c, feats], axis=1)
    fd1 = folding(params["f1"], x1)
    x2 = jnp.concatenate([fd1, feats], axis=1)
    return folding(params["f2"], x2)


if __name__ == "__main__":
    # Small, module-consistent shapes.
    bs = 2
    in_channel = 32
    step = 4                 # num_sample = 16
    hidden_dim = 64
    num_sample = step * step

    key = jax.random.PRNGKey(0)
    kp, kx, kc = jax.random.split(key, 3)

    params = init_subfold_params(kp, in_channel, hidden_dim)
    x = jax.random.normal(kx, (bs, in_channel), jnp.float32)          # latent feature
    c = jax.random.normal(kc, (bs, 3, num_sample), jnp.float32)       # seed grid

    out = subfold_forward(params, x, c, in_channel, step, tile_n=512)
    out = jax.block_until_ready(out)

    ref = subfold_reference(params, x, c, in_channel, step)
    np.testing.assert_allclose(np.asarray(out), np.asarray(ref), rtol=1e-4, atol=1e-4)
    assert out.shape == (bs, 3, num_sample)

    print("KERNEL_OK")
</pallas_src>

<mosaic_0001>
module attributes {stable_mosaic.version = 11 : i64} {
  func.func @_subfold_kernel(%arg0: i32, %arg1: i32, %arg2: memref<1x3x128xf32, #tpu.memory_space<vmem>>, %arg3: memref<1x64x1xf32, #tpu.memory_space<vmem>>, %arg4: memref<1x64x1xf32, #tpu.memory_space<vmem>>, %arg5: memref<64x3xf32, #tpu.memory_space<vmem>>, %arg6: memref<32x64xf32, #tpu.memory_space<vmem>>, %arg7: memref<32x1xf32, #tpu.memory_space<vmem>>, %arg8: memref<64x32xf32, #tpu.memory_space<vmem>>, %arg9: memref<32x64xf32, #tpu.memory_space<vmem>>, %arg10: memref<32x1xf32, #tpu.memory_space<vmem>>, %arg11: memref<3x32xf32, #tpu.memory_space<vmem>>, %arg12: memref<3x1xf32, #tpu.memory_space<vmem>>, %arg13: memref<1x3x128xf32, #tpu.memory_space<vmem>>) attributes {dimension_semantics = [#tpu.dimension_semantics<parallel>, #tpu.dimension_semantics<parallel>], iteration_bounds = array<i64: 2, 1>, scalar_prefetch = 0 : i64, scratch_operands = 0 : i64, tpu.core_type = #tpu.core_type<tc>, window_params = [{transform_indices = @transform_0, window_bounds = array<i64: 1, 3, 128>}, {transform_indices = @transform_1, window_bounds = array<i64: 1, 64, 1>}, {transform_indices = @transform_2, window_bounds = array<i64: 1, 64, 1>}, {pipeline_mode = #tpu.pipeline_mode<synchronous>, transform_indices = @transform_3, window_bounds = array<i64: 64, 3>}, {pipeline_mode = #tpu.pipeline_mode<synchronous>, transform_indices = @transform_4, window_bounds = array<i64: 32, 64>}, {pipeline_mode = #tpu.pipeline_mode<synchronous>, transform_indices = @transform_5, window_bounds = array<i64: 32, 1>}, {pipeline_mode = #tpu.pipeline_mode<synchronous>, transform_indices = @transform_6, window_bounds = array<i64: 64, 32>}, {pipeline_mode = #tpu.pipeline_mode<synchronous>, transform_indices = @transform_7, window_bounds = array<i64: 32, 64>}, {pipeline_mode = #tpu.pipeline_mode<synchronous>, transform_indices = @transform_8, window_bounds = array<i64: 32, 1>}, {pipeline_mode = #tpu.pipeline_mode<synchronous>, transform_indices = @transform_9, window_bounds = array<i64: 3, 32>}, {pipeline_mode = #tpu.pipeline_mode<synchronous>, transform_indices = @transform_10, window_bounds = array<i64: 3, 1>}, {transform_indices = @transform_11, window_bounds = array<i64: 1, 3, 128>}]} {
    %c0 = arith.constant 0 : index
    %c0_0 = arith.constant 0 : index
    %c0_1 = arith.constant 0 : index
    %0 = vector.load %arg2[%c0, %c0_0, %c0_1] : memref<1x3x128xf32, #tpu.memory_space<vmem>>, vector<1x3x128xf32>
    %1 = vector.shape_cast %0 : vector<1x3x128xf32> to vector<3x128xf32>
    %c0_2 = arith.constant 0 : index
    %c0_3 = arith.constant 0 : index
    %2 = vector.load %arg5[%c0_2, %c0_3] : memref<64x3xf32, #tpu.memory_space<vmem>>, vector<64x3xf32>
    %cst = arith.constant dense<0.000000e+00> : vector<64x128xf32>
    %3 = tpu.matmul %2, %1, %cst {dimension_numbers = #tpu.dot_dimension_numbers<[1], [0], [0], [1], [0, 0, 1, 1], [], []>} : vector<64x3xf32>, vector<3x128xf32>, vector<64x128xf32> -> vector<64x128xf32>
    %c0_4 = arith.constant 0 : index
    %c0_5 = arith.constant 0 : index
    %c0_6 = arith.constant 0 : index
    %4 = vector.load %arg3[%c0_4, %c0_5, %c0_6] : memref<1x64x1xf32, #tpu.memory_space<vmem>>, vector<1x64x1xf32>
    %5 = vector.shape_cast %4 : vector<1x64x1xf32> to vector<64x1xf32>
    %6 = vector.broadcast %5 : vector<64x1xf32> to vector<64x128xf32>
    %7 = arith.addf %3, %6 : vector<64x128xf32>
    %cst_7 = arith.constant 0.000000e+00 : f32
    %8 = vector.broadcast %cst_7 : f32 to vector<64x128xf32>
    %9 = arith.maximumf %7, %8 : vector<64x128xf32>
    %c0_8 = arith.constant 0 : index
    %c0_9 = arith.constant 0 : index
    %10 = vector.load %arg6[%c0_8, %c0_9] : memref<32x64xf32, #tpu.memory_space<vmem>>, vector<32x64xf32>
    %cst_10 = arith.constant dense<0.000000e+00> : vector<32x128xf32>
    %11 = tpu.matmul %10, %9, %cst_10 {dimension_numbers = #tpu.dot_dimension_numbers<[1], [0], [0], [1], [0, 0, 1, 1], [], []>} : vector<32x64xf32>, vector<64x128xf32>, vector<32x128xf32> -> vector<32x128xf32>
    %c0_11 = arith.constant 0 : index
    %c0_12 = arith.constant 0 : index
    %12 = vector.load %arg7[%c0_11, %c0_12] : memref<32x1xf32, #tpu.memory_space<vmem>>, vector<32x1xf32>
    %13 = vector.broadcast %12 : vector<32x1xf32> to vector<32x128xf32>
    %14 = arith.addf %11, %13 : vector<32x128xf32>
    %cst_13 = arith.constant 0.000000e+00 : f32
    %15 = vector.broadcast %cst_13 : f32 to vector<32x128xf32>
    %16 = arith.maximumf %14, %15 : vector<32x128xf32>
    %c0_14 = arith.constant 0 : index
    %c0_15 = arith.constant 0 : index
    %17 = vector.load %arg8[%c0_14, %c0_15] : memref<64x32xf32, #tpu.memory_space<vmem>>, vector<64x32xf32>
    %cst_16 = arith.constant dense<0.000000e+00> : vector<64x128xf32>
    %18 = tpu.matmul %17, %16, %cst_16 {dimension_numbers = #tpu.dot_dimension_numbers<[1], [0], [0], [1], [0, 0, 1, 1], [], []>} : vector<64x32xf32>, vector<32x128xf32>, vector<64x128xf32> -> vector<64x128xf32>
    %c0_17 = arith.constant 0 : index
    %c0_18 = arith.constant 0 : index
    %c0_19 = arith.constant 0 : index
    %19 = vector.load %arg4[%c0_17, %c0_18, %c0_19] : memref<1x64x1xf32, #tpu.memory_space<vmem>>, vector<1x64x1xf32>
    %20 = vector.shape_cast %19 : vector<1x64x1xf32> to vector<64x1xf32>
    %21 = vector.broadcast %20 : vector<64x1xf32> to vector<64x128xf32>
    %22 = arith.addf %18, %21 : vector<64x128xf32>
    %cst_20 = arith.constant 0.000000e+00 : f32
    %23 = vector.broadcast %cst_20 : f32 to vector<64x128xf32>
    %24 = arith.maximumf %22, %23 : vector<64x128xf32>
    %c0_21 = arith.constant 0 : index
    %c0_22 = arith.constant 0 : index
    %25 = vector.load %arg9[%c0_21, %c0_22] : memref<32x64xf32, #tpu.memory_space<vmem>>, vector<32x64xf32>
    %cst_23 = arith.constant dense<0.000000e+00> : vector<32x128xf32>
    %26 = tpu.matmul %25, %24, %cst_23 {dimension_numbers = #tpu.dot_dimension_numbers<[1], [0], [0], [1], [0, 0, 1, 1], [], []>} : vector<32x64xf32>, vector<64x128xf32>, vector<32x128xf32> -> vector<32x128xf32>
    %c0_24 = arith.constant 0 : index
    %c0_25 = arith.constant 0 : index
    %27 = vector.load %arg10[%c0_24, %c0_25] : memref<32x1xf32, #tpu.memory_space<vmem>>, vector<32x1xf32>
    %28 = vector.broadcast %27 : vector<32x1xf32> to vector<32x128xf32>
    %29 = arith.addf %26, %28 : vector<32x128xf32>
    %cst_26 = arith.constant 0.000000e+00 : f32
    %30 = vector.broadcast %cst_26 : f32 to vector<32x128xf32>
    %31 = arith.maximumf %29, %30 : vector<32x128xf32>
    %c0_27 = arith.constant 0 : index
    %c0_28 = arith.constant 0 : index
    %32 = vector.load %arg11[%c0_27, %c0_28] : memref<3x32xf32, #tpu.memory_space<vmem>>, vector<3x32xf32>
    %cst_29 = arith.constant dense<0.000000e+00> : vector<3x128xf32>
    %33 = tpu.matmul %32, %31, %cst_29 {dimension_numbers = #tpu.dot_dimension_numbers<[1], [0], [0], [1], [0, 0, 1, 1], [], []>} : vector<3x32xf32>, vector<32x128xf32>, vector<3x128xf32> -> vector<3x128xf32>
    %c0_30 = arith.constant 0 : index
    %c0_31 = arith.constant 0 : index
    %34 = vector.load %arg12[%c0_30, %c0_31] : memref<3x1xf32, #tpu.memory_space<vmem>>, vector<3x1xf32>
    %35 = vector.broadcast %34 : vector<3x1xf32> to vector<3x128xf32>
    %36 = arith.addf %33, %35 : vector<3x128xf32>
    %c0_32 = arith.constant 0 : index
    %c0_33 = arith.constant 0 : index
    %c0_34 = arith.constant 0 : index
    %37 = vector.load %arg13[%c0_32, %c0_33, %c0_34] : memref<1x3x128xf32, #tpu.memory_space<vmem>>, vector<1x3x128xf32>
    %38 = vector.shape_cast %37 : vector<1x3x128xf32> to vector<3x128xf32>
    %39 = vector.shape_cast %36 : vector<3x128xf32> to vector<1x3x128xf32>
    tpu.vector_store %arg13[%c0_32, %c0_33, %c0_34], %39 {strides = array<i32>} : memref<1x3x128xf32, #tpu.memory_space<vmem>>, vector<1x3x128xf32>,
    return
  }
  func.func @transform_0(%arg0: i32, %arg1: i32) -> (i32, i32, i32) {
    %c0_i32 = arith.constant 0 : i32
    %c0_i32_0 = arith.constant 0 : i32
    return %arg0, %c0_i32, %arg1 : i32, i32, i32
  }
  func.func @transform_1(%arg0: i32, %arg1: i32) -> (i32, i32, i32) {
    %c0_i32 = arith.constant 0 : i32
    %c0_i32_0 = arith.constant 0 : i32
    %c0_i32_1 = arith.constant 0 : i32
    return %arg0, %c0_i32, %c0_i32_0 : i32, i32, i32
  }
  func.func @transform_2(%arg0: i32, %arg1: i32) -> (i32, i32, i32) {
    %c0_i32 = arith.constant 0 : i32
    %c0_i32_0 = arith.constant 0 : i32
    %c0_i32_1 = arith.constant 0 : i32
    return %arg0, %c0_i32, %c0_i32_0 : i32, i32, i32
  }
  func.func @transform_3(%arg0: i32, %arg1: i32) -> (i32, i32) {
    %c0_i32 = arith.constant 0 : i32
    %c0_i32_0 = arith.constant 0 : i32
    %c0_i32_1 = arith.constant 0 : i32
    return %c0_i32, %c0_i32_0 : i32, i32
  }
  func.func @transform_4(%arg0: i32, %arg1: i32) -> (i32, i32) {
    %c0_i32 = arith.constant 0 : i32
    %c0_i32_0 = arith.constant 0 : i32
    %c0_i32_1 = arith.constant 0 : i32
    return %c0_i32, %c0_i32_0 : i32, i32
  }
  func.func @transform_5(%arg0: i32, %arg1: i32) -> (i32, i32) {
    %c0_i32 = arith.constant 0 : i32
    %c0_i32_0 = arith.constant 0 : i32
    %c0_i32_1 = arith.constant 0 : i32
    return %c0_i32, %c0_i32_0 : i32, i32
  }
  func.func @transform_6(%arg0: i32, %arg1: i32) -> (i32, i32) {
    %c0_i32 = arith.constant 0 : i32
    %c0_i32_0 = arith.constant 0 : i32
    %c0_i32_1 = arith.constant 0 : i32
    return %c0_i32, %c0_i32_0 : i32, i32
  }
  func.func @transform_7(%arg0: i32, %arg1: i32) -> (i32, i32) {
    %c0_i32 = arith.constant 0 : i32
    %c0_i32_0 = arith.constant 0 : i32
    %c0_i32_1 = arith.constant 0 : i32
    return %c0_i32, %c0_i32_0 : i32, i32
  }
  func.func @transform_8(%arg0: i32, %arg1: i32) -> (i32, i32) {
    %c0_i32 = arith.constant 0 : i32
    %c0_i32_0 = arith.constant 0 : i32
    %c0_i32_1 = arith.constant 0 : i32
    return %c0_i32, %c0_i32_0 : i32, i32
  }
  func.func @transform_9(%arg0: i32, %arg1: i32) -> (i32, i32) {
    %c0_i32 = arith.constant 0 : i32
    %c0_i32_0 = arith.constant 0 : i32
    %c0_i32_1 = arith.constant 0 : i32
    return %c0_i32, %c0_i32_0 : i32, i32
  }
  func.func @transform_10(%arg0: i32, %arg1: i32) -> (i32, i32) {
    %c0_i32 = arith.constant 0 : i32
    %c0_i32_0 = arith.constant 0 : i32
    %c0_i32_1 = arith.constant 0 : i32
    return %c0_i32, %c0_i32_0 : i32, i32
  }
  func.func @transform_11(%arg0: i32, %arg1: i32) -> (i32, i32, i32) {
    %c0_i32 = arith.constant 0 : i32
    %c0_i32_0 = arith.constant 0 : i32
    return %arg0, %c0_i32, %arg1 : i32, i32, i32
  }
}

</mosaic_0001>

<bundles_post_ra>
// kernel: tpu_custom_call.1
= control target key start
LH: loop header
LB: loop body
LE: loop exit
PB: predicated region body
PF: predicated region fallthrough
CT: control target
= control target key end

     0   :  { %s1580_s17 = smov 0   ;;  %s1582_s18 = smov 0   ;;  %s1758_s0 = inlined_call_operand.vmem [shape: f32[2,3,128], index: 0, kind: input, shape index: {}]   ;;  %s1759_s1 = inlined_call_operand.vmem [shape: f32[2,64,1], index: 1, kind: input, shape index: {}]   ;;  %s1760_s2 = inlined_call_operand.vmem [shape: f32[2,64,1], index: 2, kind: input, shape index: {}]   ;;  %s1761_s3 = inlined_call_operand.vmem [shape: f32[64,3], index: 3, kind: input, shape index: {}]   ;;  %s1762_s4 = inlined_call_operand.vmem [shape: f32[32,64], index: 4, kind: input, shape index: {}]   ;;  %s1763_s5 = inlined_call_operand.vmem [shape: f32[32,1], index: 5, kind: input, shape index: {}]   ;;  %s1764_s6 = inlined_call_operand.vmem [shape: f32[64,32], index: 6, kind: input, shape index: {}]   ;;  %s1765_s7 = inlined_call_operand.vmem [shape: f32[32,64], index: 7, kind: input, shape index: {}]   ;;  %s1766_s8 = inlined_call_operand.vmem [shape: f32[32,1], index: 8, kind: input, shape index: {}]   ;;  %s1767_s9 = inlined_call_operand.vmem [shape: f32[3,32], index: 9, kind: input, shape index: {}]   ;;  %s1768_s10 = inlined_call_operand.vmem [shape: f32[3,1], index: 10, kind: input, shape index: {}]   ;;  %s1769_s11 = inlined_call_operand.vmem [shape: f32[2,3,128], index: 11, kind: output, shape index: {}]  }
   0x1   :  { %s1584_s19 = smov 0  }
   0x2 LB: > { %s33_s20 = sadd.s32 1, %s1511_s18  ;;  %p1288_p0 = scmp.ge.s32.totalorder %s1515_s19, 1  ;;  %s1515_s19 = sphi %s1584_s19, %s21_s19   ;;  %s1511_s18 = sphi %s1582_s18, %s1771_s18   ;;  %s1507_s17 = sphi %s1580_s17, %s1770_s17  }
   0x3   : > { %p35_p1 = scmp.ge.s32.totalorder %s33_s20, 2  ;;  %p375_p2 = scmp.lt.s32.totalorder %s1515_s19, 3 }
   0x5   : > { %s1773_s20 = smov (%p35_p1, %s33_s20), 0  ;;  %p376_p3 = pnand %p1288_p0, %p375_p2 }
   0x6   : > { %p429_p4 = scmp.lt.s32.totalorder (!%p376_p3), %s1507_s17, 1 }
   0x7   : > { %379 = sbr.rel (%p376_p3) target bundleno = 1081 (0x439), region = 64 }
   0xc   : > { %v454_v0 = vld [vmem:[%s1761_s3] sm:$0xff]  ;;  %vm510_vm0 = vcmask 23552   ;;  %s1775_s17 = smov (!%p429_p4, %s1507_s17), 1  ;;  %v1517_v1 = vmov 0   ;;  %vm535_vm1 = vcmask 1042432   ;;  %v455_v3 = vld [vmem:[%s1761_s3 + $0x8] sm:$0xff] }
   0xd   : > { %1377 = vmatprep.mubr.msk.f32.mxu0 %vm510_vm0, %v454_v0  ;;  %1491 = vset.pattern.permute.xlu0 %v1517_v1  ;;  %s1289_s23 = sshll.u32 %s1775_s17, 2  ;;  %s1323_s24 = sshll.u32 %s1775_s17, 6  ;;  %v456_v5 = vld [vmem:[%s1761_s3 + $0x10] sm:$0xff]  ;;  %v457_v9 = vld [vmem:[%s1761_s3 + $0x18] sm:$0xff]  ;;  %v458_v10 = vld [vmem:[%s1761_s3 + $0x20] sm:$0xff]  ;;  %vm680_vm2 = vcmask 523264  }
   0xe   : > { %1492 = vset.pattern.permute.xlu1 %v1517_v1  ;;  %s435_s27 = scalar_lea.vmem %s1758_s0, %s1289_s23  ;;  %s440_s30 = scalar_lea.vmem %s1759_s1, %s1323_s24  ;;  %v459_v13 = vld [vmem:[%s1761_s3 + $0x28] sm:$0xff]  ;;  %v460_v14 = vld [vmem:[%s1761_s3 + $0x30] sm:$0xff]  ;;  %v461_v17 = vld [vmem:[%s1761_s3 + $0x38] sm:$0xff]  ;;  %vm838_vm3 = vcmask 261120   ;;  %vm1519_vm4 = vmmov 0  }
   0xf   : > { %v453_v2 = vld [vmem:[%s435_s27] sm:$0x7]  ;;  %v469_v4 = vld [vmem:[%s440_s30 + $0x38] sm:$0xff]  ;;  %v467_v6 = vld [vmem:[%s440_s30 + $0x28] sm:$0xff]  ;;  %s445_s27 = scalar_lea.vmem %s1760_s2, %s1323_s24  ;;  %s452_s15 = scalar_lea.vmem %s1769_s11, %s1289_s23 }
  0x10   : > { %1375 = vmatprep.subr.msk.mxu0 %vm535_vm1, %v453_v2  ;;  %507 = vperm.xlu0 %1491, %v469_v4   ;;  %v468_v7 = vld [vmem:[%s440_s30 + $0x30] sm:$0xff]  ;;  %v466_v8 = vld [vmem:[%s440_s30 + $0x20] sm:$0xff]  ;;  %v465_v11 = vld [vmem:[%s440_s30 + $0x18] sm:$0xff] }
  0x11   : > { %1376 = vmatpush3.msk.msra.mxu0 %vm535_vm1, %v453_v2  ;;  %497 = vperm.xlu1 %1492, %v467_v6   ;;  %v464_v12 = vld [vmem:[%s440_s30 + $0x10] sm:$0xff]  ;;  %v463_v15 = vld [vmem:[%s440_s30 + $0x8] sm:$0xff]  ;;  %v462_v16 = vld [vmem:[%s440_s30] sm:$0xff] }
  0x12   : > { %1378 = vmatmul.mubr.msk.f32.vlgmr.msra.gmra.mxu0 %vm510_vm0, %v455_v3  ;;  %v659_v18 = vld [vmem:[%s1763_s5 + $0x18] sm:$0xff]  ;;  %v658_v19 = vld [vmem:[%s1763_s5 + $0x10] sm:$0xff]  ;;  %v657_v20 = vld [vmem:[%s1763_s5 + $0x8] sm:$0xff] }
  0x13   : > { %1380 = vmatprep.mubr.msk.f32.mxu0 %vm510_vm0, %v456_v5  ;;  %v656_v21 = vld [vmem:[%s1763_s5] sm:$0xff]  ;;  %v797_v22 = vld [vmem:[%s445_s27 + $0x38] sm:$0xff]  ;;  %v796_v23 = vld [vmem:[%s445_s27 + $0x30] sm:$0xff] }
  0x14   : > { %502 = vperm.xlu0 %1491, %v468_v7   ;;  %v795_v24 = vld [vmem:[%s445_s27 + $0x28] sm:$0xff]  ;;  %v794_v25 = vld [vmem:[%s445_s27 + $0x20] sm:$0xff]  ;;  %v793_v26 = vld [vmem:[%s445_s27 + $0x18] sm:$0xff] }
  0x15   : > { %492 = vperm.xlu1 %1492, %v466_v8   ;;  %v792_v27 = vld [vmem:[%s445_s27 + $0x10] sm:$0xff]  ;;  %v791_v28 = vld [vmem:[%s445_s27 + $0x8] sm:$0xff]  ;;  %v790_v29 = vld [vmem:[%s445_s27] sm:$0xff] }
  0x16   : > { %1381 = vmatmul.mubr.msk.f32.gmra.mxu0 %vm510_vm0, %v457_v9  ;;  %v983_v30 = vld [vmem:[%s1766_s8 + $0x18] sm:$0xff]  ;;  %v982_v31 = vld [vmem:[%s1766_s8 + $0x10] sm:$0xff]  ;;  %v981_v32 = vld [vmem:[%s1766_s8 + $0x8] sm:$0xff] }
  0x17   : > { %1383 = vmatprep.mubr.msk.f32.mxu0 %vm510_vm0, %v458_v10  ;;  %v980_v33 = vld [vmem:[%s1766_s8] sm:$0xff]  ;;  %v653_v4 = vld [vmem:[%s1762_s4 + $0x8] sm:$0xff]  ;;  %v654_v5 = vld [vmem:[%s1762_s4 + $0x10] sm:$0xff] }
  0x18   : > { %487 = vperm.xlu0 %1491, %v465_v11   ;;  %v1106_v34 = vld [vmem:[%s1768_s10] sm:$0x7]  ;;  %v655_v6 = vld [vmem:[%s1762_s4 + $0x18] sm:$0xff] }
  0x19   : > { %482 = vperm.xlu1 %1492, %v464_v12   ;;  %v652_v35 = vld [vmem:[%s1762_s4] sm:$0xff] }
  0x1a   : > { %1384 = vmatmul.mubr.msk.f32.gmra.mxu0 %vm510_vm0, %v459_v13  ;;  %1405 = vmatprep.mubr.msk.f32.mxu1 %vm680_vm2, %v652_v35  ;;  %v782_v7 = vld [vmem:[%s1764_s6] sm:$0xff] }
  0x1b   : > { %1386 = vmatprep.mubr.msk.f32.mxu0 %vm510_vm0, %v460_v14 }
  0x1c   : > { %477 = vperm.xlu0 %1491, %v463_v15  }
  0x1d   : > { %472 = vperm.xlu1 %1492, %v462_v16  }
  0x1e   : > { %1387 = vmatmul.mubr.msk.f32.gmra.mxu0 %vm510_vm0, %v461_v17 }
  0x1f   : > { %1419 = vmatprep.mubr.msk.f32.mxu0 %vm838_vm3, %v782_v7 }
  0x20   : > { %677 = vperm.xlu0 %1491, %v659_v18  }
  0x21   : > { %672 = vperm.xlu1 %1492, %v658_v19  }
  0x24   : > { %667 = vperm.xlu0 %1491, %v657_v20  }
  0x25   : > { %662 = vperm.xlu1 %1492, %v656_v21  }
  0x28   : > { %835 = vperm.xlu0 %1491, %v797_v22  }
  0x29   : > { %830 = vperm.xlu1 %1492, %v796_v23  }
  0x2c   : > { %825 = vperm.xlu0 %1491, %v795_v24   ;;  %v783_v24 = vld [vmem:[%s1764_s6 + $0x8] sm:$0xff] }
  0x2d   : > { %820 = vperm.xlu1 %1492, %v794_v25   ;;  %v784_v25 = vld [vmem:[%s1764_s6 + $0x10] sm:$0xff] }
  0x30   : > { %815 = vperm.xlu0 %1491, %v793_v26   ;;  %v785_v26 = vld [vmem:[%s1764_s6 + $0x18] sm:$0xff] }
  0x31   : > { %810 = vperm.xlu1 %1492, %v792_v27   ;;  %v786_v27 = vld [vmem:[%s1764_s6 + $0x20] sm:$0xff] }
  0x34   : > { %805 = vperm.xlu0 %1491, %v791_v28   ;;  %v787_v28 = vld [vmem:[%s1764_s6 + $0x28] sm:$0xff] }
  0x35   : > { %800 = vperm.xlu1 %1492, %v790_v29   ;;  %v788_v29 = vld [vmem:[%s1764_s6 + $0x30] sm:$0xff] }
  0x38   : > { %1001 = vperm.xlu0 %1491, %v983_v30   ;;  %v789_v30 = vld [vmem:[%s1764_s6 + $0x38] sm:$0xff] }
  0x39   : > { %996 = vperm.xlu1 %1492, %v982_v31   ;;  %v976_v31 = vld [vmem:[%s1765_s7] sm:$0xff] }
  0x3c   : > { %991 = vperm.xlu0 %1491, %v981_v32  }
  0x3d   : > { %986 = vperm.xlu1 %1492, %v980_v33  }
  0x40   : > { %1109 = vperm.xlu0 %1491, %v1106_v34  }
  0x8b   : > { %v508_v38 = vpop.permute.xlu0 %507 }
  0x8c   : > { %v498_v40 = vpop.permute.xlu1 %497 }
  0x8f   : > { %v503_v43 = vpop.permute.xlu0 %502 }
  0x90   : > { %v493_v45 = vpop.permute.xlu1 %492 }
  0x93   : > { %v488_v52 = vpop.permute.xlu0 %487 }
  0x94   : > { %v483_v55 = vpop.permute.xlu1 %482 }
  0x97   : > { %v478_v60 = vpop.permute.xlu0 %477 }
  0x98   : > { %v473_v63 = vpop.permute.xlu1 %472 }
  0x9b   : > { %v678_v8 = vpop.permute.xlu0 %677 }
  0x9c   : > { %v673_v10 = vpop.permute.xlu1 %672 }
  0x9f   : > { %v668_v14 = vpop.permute.xlu0 %667 }
  0xa0   : > { %v663_v19 = vpop.permute.xlu1 %662 }
  0xa3   : > { %v836_v34 = vpop.permute.xlu0 %835 }
  0xd2   : > { %v1379_v36 = vpop.f32.mrf.mxu0 }
  0xd3   : > { %v611_v61 = vadd.f32 %v1379_v36, %v478_v60  ;;  %v831_v36 = vpop.permute.xlu1 %830 }
  0xd4   : > { %v605_v37 = vpop.f32.mrf.mxu0 }
  0xd5   : > { %v606_v0 = vadd.f32 %v605_v37, %v473_v63  ;;  %v645_v2 = vmax.f32 %v611_v61, 0.0 }
  0xd6   : > { %v1382_v39 = vpop.f32.mrf.mxu0 }
  0xd7   : > { %v621_v56 = vadd.f32 %v1382_v39, %v488_v52  ;;  %v644_v3 = vmax.f32 %v606_v0, 0.0  ;;  %v826_v39 = vpop.permute.xlu0 %825  ;;  %v977_v0 = vld [vmem:[%s1765_s7 + $0x8] sm:$0xff] }
  0xd8   : > { %v615_v41 = vpop.f32.mrf.mxu0 }
  0xd9   : > { %v616_v58 = vadd.f32 %v615_v41, %v483_v55  ;;  %v647_v62 = vmax.f32 %v621_v56, 0.0  ;;  %v821_v41 = vpop.permute.xlu1 %820 }
  0xda   : > { %v1385_v42 = vpop.f32.mrf.mxu0 }
  0xdb   : > { %v631_v49 = vadd.f32 %v1385_v42, %v498_v40  ;;  %v646_v1 = vmax.f32 %v616_v58, 0.0 }
  0xdc   : > { %v625_v44 = vpop.f32.mrf.mxu0 }
  0xdd   : > { %v626_v53 = vadd.f32 %v625_v44, %v493_v45  ;;  %v649_v57 = vmax.f32 %v631_v49, 0.0 }
  0xde   : > { %v1388_v46 = vpop.f32.mrf.mxu0 }
  0xdf   : > { %v641_v47 = vadd.f32 %v1388_v46, %v508_v38  ;;  %v648_v59 = vmax.f32 %v626_v53, 0.0 }
  0xe0   : > { %v635_v48 = vpop.f32.mrf.mxu0 }
  0xe1   : > { %v651_v50 = vmax.f32 %v641_v47, 0.0  ;;  %v636_v51 = vadd.f32 %v635_v48, %v503_v43  ;;  %v816_v48 = vpop.permute.xlu0 %815 }
  0xe3   : > { %v650_v54 = vmax.f32 %v636_v51, 0.0  ;;  %1389 = vmatprep.subr.mxu1 %v651_v50  ;;  %v811_v51 = vpop.permute.xlu1 %810 }
  0xe4   : > { %1390 = vmatpush3.msra.mxu1 %v651_v50 }
  0xe5   : > { %1391 = vmatprep.subr.mxu1 %v650_v54  ;;  %v806_v56 = vpop.permute.xlu0 %805 }
  0xe6   : > { %1392 = vmatpush3.msra.mxu1 %v650_v54 }
  0xe7   : > { %1393 = vmatprep.subr.mxu1 %v649_v57 }
  0xe8   : > { %1394 = vmatpush3.msra.mxu1 %v649_v57 }
  0xe9   : > { %1395 = vmatprep.subr.mxu1 %v648_v59 }
  0xea   : > { %1396 = vmatpush3.msra.mxu1 %v648_v59  ;;  %v801_v59 = vpop.permute.xlu1 %800 }
  0xeb   : > { %1397 = vmatprep.subr.mxu1 %v647_v62 }
  0xec   : > { %1398 = vmatpush3.msra.mxu1 %v647_v62 }
  0xed   : > { %1399 = vmatprep.subr.mxu1 %v646_v1 }
  0xee   : > { %1400 = vmatpush3.msra.mxu1 %v646_v1  ;;  %v978_v1 = vld [vmem:[%s1765_s7 + $0x10] sm:$0xff] }
  0xef   : > { %1401 = vmatprep.subr.mxu1 %v645_v2 }
  0xf0   : > { %1402 = vmatpush3.msra.mxu1 %v645_v2  ;;  %v979_v2 = vld [vmem:[%s1765_s7 + $0x18] sm:$0xff] }
  0xf1   : > { %1403 = vmatprep.subr.mxu1 %v644_v3 }
  0xf2   : > { %1404 = vmatpush3.msra.mxu1 %v644_v3  ;;  %v1518_v3 = vmov 0.0  }
  0xf3   : > { %1406 = vmatmul.mubr.msk.f32.vlgmr.msra.gmra.mxu1 %vm680_vm2, %v653_v4  ;;  %v1002_v4 = vpop.permute.xlu0 %1001 }
  0xf4   : > { %1408 = vmatprep.mubr.msk.f32.mxu1 %vm680_vm2, %v654_v5 }
  0xf7   : > { %1409 = vmatmul.mubr.msk.f32.gmra.mxu1 %vm680_vm2, %v655_v6  ;;  %v997_v6 = vpop.permute.xlu1 %996 }
  0xf8   : > { %1447 = vmatprep.mubr.msk.f32.mxu1 %vm680_vm2, %v976_v31 }
 0x1b3   : > { %v1407_v9 = vpop.f32.mrf.mxu1 }
 0x1b4   : > { %v765_v16 = vadd.f32 %v1407_v9, %v668_v14 }
 0x1b5   : > { %v759_v11 = vpop.f32.mrf.mxu1 }
 0x1b6   : > { %v760_v20 = vadd.f32 %v759_v11, %v663_v19  ;;  %v779_v22 = vmax.f32 %v765_v16, 0.0 }
 0x1b7   : > { %v1410_v12 = vpop.f32.mrf.mxu1 }
 0x1b8   : > { %v775_v13 = vadd.f32 %v1410_v12, %v678_v8  ;;  %v778_v23 = vmax.f32 %v760_v20, 0.0  ;;  %v1105_v20 = vld [vmem:[%s1767_s9] sm:$0x7] }
 0x1b9   : > { %v769_v15 = vpop.f32.mrf.mxu1 }
 0x1ba   : > { %v781_v17 = vmax.f32 %v775_v13, 0.0  ;;  %v770_v18 = vadd.f32 %v769_v15, %v673_v10  ;;  %v992_v10 = vpop.permute.xlu0 %991  ;;  %v987_v15 = vpop.permute.xlu1 %986 }
 0x1bc   : > { %v780_v21 = vmax.f32 %v770_v18, 0.0  ;;  %1411 = vmatprep.subr.mxu0 %v781_v17 }
 0x1bd   : > { %1412 = vmatpush3.msra.mxu0 %v781_v17 }
 0x1be   : > { %1413 = vmatprep.subr.mxu0 %v780_v21 }
 0x1bf   : > { %1414 = vmatpush3.msra.mxu0 %v780_v21  ;;  %v1110_v21 = vpop.permute.xlu0 %1109 }
 0x1c0   : > { %1415 = vmatprep.subr.mxu0 %v779_v22 }
 0x1c1   : > { %1416 = vmatpush3.msra.mxu0 %v779_v22 }
 0x1c2   : > { %1417 = vmatprep.subr.mxu0 %v778_v23 }
 0x1c3   : > { %1418 = vmatpush3.msra.mxu0 %v778_v23 }
 0x1c4   : > { %1420 = vmatmul.mubr.msk.f32.vlgmr.msra.gmra.mxu0 %vm838_vm3, %v783_v24  ;;  %1453 = vmatprep.subr.mxu0 %v1518_v3 }
 0x1c5   : > { %1422 = vmatprep.mubr.msk.f32.mxu0 %vm838_vm3, %v784_v25 }
 0x1c8   : > { %1423 = vmatmul.mubr.msk.f32.gmra.mxu0 %vm838_vm3, %v785_v26 }
 0x1c9   : > { %1425 = vmatprep.mubr.msk.f32.mxu0 %vm838_vm3, %v786_v27 }
 0x1cc   : > { %1426 = vmatmul.mubr.msk.f32.gmra.mxu0 %vm838_vm3, %v787_v28 }
 0x1cd   : > { %1428 = vmatprep.mubr.msk.f32.mxu0 %vm838_vm3, %v788_v29 }
 0x1d0   : > { %1429 = vmatmul.mubr.msk.f32.gmra.mxu0 %vm838_vm3, %v789_v30 }
 0x1d1   : > { %1461 = vmatprep.mubr.msk.f32.mxu0 %vm1519_vm4, %v1518_v3 }
 0x284   : > { %v1421_v32 = vpop.f32.mrf.mxu0 }
 0x285   : > { %v935_v57 = vadd.f32 %v1421_v32, %v806_v56 }
 0x286   : > { %v929_v33 = vpop.f32.mrf.mxu0 }
 0x287   : > { %v930_v60 = vadd.f32 %v929_v33, %v801_v59  ;;  %v969_v62 = vmax.f32 %v935_v57, 0.0 }
 0x288   : > { %v1424_v35 = vpop.f32.mrf.mxu0 }
 0x289   : > { %v945_v52 = vadd.f32 %v1424_v35, %v816_v48  ;;  %v968_v63 = vmax.f32 %v930_v60, 0.0 }
 0x28a   : > { %v939_v37 = vpop.f32.mrf.mxu0 }
 0x28b   : > { %v940_v54 = vadd.f32 %v939_v37, %v811_v51  ;;  %v971_v58 = vmax.f32 %v945_v52, 0.0 }
 0x28c   : > { %v1427_v38 = vpop.f32.mrf.mxu0 }
 0x28d   : > { %v955_v45 = vadd.f32 %v1427_v38, %v826_v39  ;;  %v970_v61 = vmax.f32 %v940_v54, 0.0 }
 0x28e   : > { %v949_v40 = vpop.f32.mrf.mxu0 }
 0x28f   : > { %v950_v49 = vadd.f32 %v949_v40, %v821_v41  ;;  %v973_v53 = vmax.f32 %v955_v45, 0.0 }
 0x290   : > { %v1430_v42 = vpop.f32.mrf.mxu0 }
 0x291   : > { %v965_v43 = vadd.f32 %v1430_v42, %v836_v34  ;;  %v972_v55 = vmax.f32 %v950_v49, 0.0 }
 0x292   : > { %v959_v44 = vpop.f32.mrf.mxu0 }
 0x293   : > { %v975_v46 = vmax.f32 %v965_v43, 0.0  ;;  %v960_v47 = vadd.f32 %v959_v44, %v831_v36 }
 0x295   : > { %v974_v50 = vmax.f32 %v960_v47, 0.0  ;;  %1431 = vmatprep.subr.mxu1 %v975_v46 }
 0x296   : > { %1432 = vmatpush3.msra.mxu1 %v975_v46 }
 0x297   : > { %1433 = vmatprep.subr.mxu1 %v974_v50 }
 0x298   : > { %1434 = vmatpush3.msra.mxu1 %v974_v50 }
 0x299   : > { %1435 = vmatprep.subr.mxu1 %v973_v53 }
 0x29a   : > { %1436 = vmatpush3.msra.mxu1 %v973_v53 }
 0x29b   : > { %1437 = vmatprep.subr.mxu1 %v972_v55 }
 0x29c   : > { %1438 = vmatpush3.msra.mxu1 %v972_v55 }
 0x29d   : > { %1439 = vmatprep.subr.mxu1 %v971_v58 }
 0x29e   : > { %1440 = vmatpush3.msra.mxu1 %v971_v58 }
 0x29f   : > { %1441 = vmatprep.subr.mxu1 %v970_v61 }
 0x2a0   : > { %1442 = vmatpush3.msra.mxu1 %v970_v61 }
 0x2a1   : > { %1443 = vmatprep.subr.mxu1 %v969_v62 }
 0x2a2   : > { %1444 = vmatpush3.msra.mxu1 %v969_v62 }
 0x2a3   : > { %1445 = vmatprep.subr.mxu1 %v968_v63 }
 0x2a4   : > { %1446 = vmatpush3.msra.mxu1 %v968_v63 }
 0x2a5   : > { %1448 = vmatmul.mubr.msk.f32.vlgmr.msra.gmra.mxu1 %vm680_vm2, %v977_v0 }
 0x2a6   : > { %1450 = vmatprep.mubr.msk.f32.mxu1 %vm680_vm2, %v978_v1 }
 0x2a9   : > { %1451 = vmatmul.mubr.msk.f32.gmra.mxu1 %vm680_vm2, %v979_v2 }
 0x365   : > { %v1449_v5 = vpop.f32.mrf.mxu1 }
 0x366   : > { %v1088_v12 = vadd.f32 %v1449_v5, %v992_v10 }
 0x367   : > { %v1082_v7 = vpop.f32.mrf.mxu1 }
 0x368   : > { %v1083_v16 = vadd.f32 %v1082_v7, %v987_v15  ;;  %v1102_v18 = vmax.f32 %v1088_v12, 0.0 }
 0x369   : > { %v1452_v8 = vpop.f32.mrf.mxu1 }
 0x36a   : > { %v1098_v9 = vadd.f32 %v1452_v8, %v1002_v4  ;;  %v1101_v19 = vmax.f32 %v1083_v16, 0.0 }
 0x36b   : > { %v1092_v11 = vpop.f32.mrf.mxu1 }
 0x36c   : > { %v1104_v13 = vmax.f32 %v1098_v9, 0.0  ;;  %v1093_v14 = vadd.f32 %v1092_v11, %v997_v6 }
 0x36e   : > { %v1103_v17 = vmax.f32 %v1093_v14, 0.0  ;;  %1454 = vmatpush3.msra.mxu0 %v1104_v13 }
 0x36f   : > { %1455 = vmatprep.subr.mxu0 %v1518_v3 }
 0x370   : > { %1456 = vmatpush3.msra.mxu0 %v1103_v17 }
 0x371   : > { %1457 = vmatprep.subr.mxu0 %v1518_v3 }
 0x372   : > { %1458 = vmatpush3.msra.mxu0 %v1102_v18 }
 0x373   : > { %1459 = vmatprep.subr.mxu0 %v1518_v3 }
 0x374   : > { %1460 = vmatpush3.msra.mxu0 %v1101_v19 }
 0x375   : > { %1462 = vmatmul.mubr.msk.f32.vlgmr.msra.gmra.mxu0 %vm838_vm3, %v1105_v20 }
 0x435   : > { %v1181_v22 = vpop.f32.mrf.mxu0 }
 0x436   : > { %v1182_v23 = vadd.f32 %v1181_v22, %v1110_v21 }
 0x437   : > { %v1463_v24 = vpop.f32.mrf.mxu0 }
 0x438   : > { %1185 = vst [vmem:[%s452_s15] sm:$0x7] %v1182_v23 }
 0x439 PF: > { %s21_s19 = sadd.s32 1, %s1515_s19   ;;  %s1770_s17 = smov %s1511_s18 }
 0x43a   : > { %p18_p5 = scmp.ge.s32.totalorder %s21_s19, 4   ;;  %s1771_s18 = smov %s1773_s20 }
 0x43c   :  { %20 = sbr.rel (!%p18_p5) target bundleno = 2 (0x2), region = 100 }

</bundles_post_ra>
